<compile_context>
chip_gen: v6e
topology: v6e:2x2x1
jax: 0.10.0
libtpu: 0.0.40
codegen_flags: <defaults>
</compile_context>

<pallas_src>
import math

import jax
import jax.numpy as jnp
from jax.experimental import pallas as pl
from jax.experimental.pallas import tpu as pltpu


def _swiglu_kernel(x_ref, wc_ref, bc_ref, o_ref, acc_ref):
    """One grid step: acc += x @ [W1|W2]; epilogue: o = z1 * SiLU(z2)."""
    k = pl.program_id(2)

    @pl.when(k == 0)
    def _():
        # Fold both biases into the accumulator init (interleaved like wc).
        acc_ref[...] = jnp.broadcast_to(
            bc_ref[...].astype(jnp.float32), acc_ref.shape)

    # Single fused MXU dot per step (operands may be bf16; accumulate in f32).
    acc_ref[...] += jnp.dot(x_ref[...], wc_ref[...],
                            preferred_element_type=jnp.float32)

    @pl.when(k == pl.num_programs(2) - 1)
    def _():
        tn = acc_ref.shape[1] // 2
        z1 = acc_ref[:, :tn]
        z2 = acc_ref[:, tn:]
        # SiLU(z2) = z2 * sigmoid(z2); sigmoid lowers to the EUP slot.
        o_ref[...] = (z1 * (z2 * jax.nn.sigmoid(z2))).astype(o_ref.dtype)


def _round_up(x, m):
    return (x + m - 1) // m * m


def swiglu(x, w1, b1, w2, b2, *, tm=512, tk=1024, tn=512,
           compute_dtype=None, w_buffers=2):
    """SwiGLU forward: linear1(x) * SiLU(linear2(x)).

    x       : (..., in_dims)
    w1, w2  : (out_dims, in_dims)   (PyTorch nn.Linear weight layout)
    b1, b2  : (out_dims,)
    compute_dtype : dtype used for the MXU operands (default: x.dtype).
                    bf16 is recommended on v5e/v6e/v7x; accumulation stays f32.
    w_buffers     : pipeline depth for the fused weight stream (2 = default
                    double buffering; 3 helps if weight DMA is exposed).
    """
    orig_batch = x.shape[:-1]
    in_dims = x.shape[-1]
    out_dims = w1.shape[0]
    out_dtype = x.dtype
    cdt = jnp.dtype(compute_dtype) if compute_dtype is not None else jnp.dtype(x.dtype)

    M = math.prod(orig_batch) if orig_batch else 1
    x2 = x.reshape(M, in_dims)

    # Clip tiles to the (8,128)-aligned problem size; keep every block,
    # including the output, lane-dense (unmasked vst).
    tm = min(tm, _round_up(M, 8))
    tk = min(tk, _round_up(in_dims, 128))
    tn = min(tn, _round_up(out_dims, 128))

    Mp = _round_up(M, tm)
    Kp = _round_up(in_dims, tk)
    Np = _round_up(out_dims, tn)

    # --- x: cast + pad only when needed (aligned shapes skip the extra copy).
    xp = x2.astype(cdt)
    if (Mp, Kp) != (M, in_dims):
        xp = jnp.pad(xp, ((0, Mp - M), (0, Kp - in_dims)))

    # --- Weights: one (Kp, 2*Np) array with W1^T / W2^T columns interleaved
    # per tn-wide output tile, so each grid step streams ONE weight block and
    # issues ONE dot.  Zero padding of K rows / N cols is exact.
    # NOTE: for repeated calls this prep should be hoisted to init (it is a
    # pure function of the weights and tn) — here it runs per call.
    def prep_w(w):
        wt = w.T.astype(cdt)
        if wt.shape != (Kp, Np):
            wt = jnp.pad(wt, ((0, Kp - in_dims), (0, Np - out_dims)))
        return wt.reshape(Kp, Np // tn, 1, tn)

    wc = jnp.concatenate([prep_w(w1), prep_w(w2)], axis=2).reshape(Kp, 2 * Np)

    def prep_b(b):
        bp = b.astype(jnp.float32)
        if bp.shape != (Np,):
            bp = jnp.pad(bp, ((0, Np - out_dims),))
        return bp.reshape(Np // tn, 1, tn)

    bc = jnp.concatenate([prep_b(b1), prep_b(b2)], axis=1).reshape(1, 2 * Np)

    grid = (Mp // tm, Np // tn, Kp // tk)

    # --- Cost estimate including re-stream factors.
    c_bytes = jnp.dtype(cdt).itemsize
    o_bytes = jnp.dtype(out_dtype).itemsize
    bytes_accessed = (
        Mp * Kp * c_bytes * (Np // tn)            # x re-read per N tile
        + Kp * 2 * Np * c_bytes * (Mp // tm)      # fused weights re-read per M tile
        + Mp * Np * o_bytes                       # output write
        + 2 * Np * 4 * (Mp // tm) * (Kp // tk)    # biases (tiny)
    )
    cost = pl.CostEstimate(
        flops=2 * Mp * Kp * (2 * Np) + 6 * Mp * Np,
        transcendentals=Mp * Np,
        bytes_accessed=int(bytes_accessed),
    )

    # --- VMEM budget: double-buffered x/weight/out tiles + the f32 accumulator.
    live_bytes = (max(2, w_buffers) * tk * 2 * tn * c_bytes   # fused weight stream
                  + 2 * tm * tk * c_bytes                     # x stream
                  + 2 * tm * tn * o_bytes                     # output stream
                  + tm * 2 * tn * 4)                          # f32 accumulator
    vmem_limit = int(min(48 * 1024 * 1024,
                         max(32 * 1024 * 1024, live_bytes + (8 << 20))))

    w_spec_kwargs = {} if w_buffers == 2 else {"pipeline_mode": pl.Buffered(w_buffers)}

    out = pl.pallas_call(
        _swiglu_kernel,
        out_shape=jax.ShapeDtypeStruct((Mp, Np), out_dtype),
        grid_spec=pltpu.PrefetchScalarGridSpec(
            num_scalar_prefetch=0,
            grid=grid,
            in_specs=[
                pl.BlockSpec((tm, tk), lambda i, j, k: (i, k)),               # x
                pl.BlockSpec((tk, 2 * tn), lambda i, j, k: (k, j),
                             **w_spec_kwargs),                                # [W1|W2]
                pl.BlockSpec((1, 2 * tn), lambda i, j, k: (0, j)),            # [b1|b2]
            ],
            out_specs=pl.BlockSpec((tm, tn), lambda i, j, k: (i, j)),
            scratch_shapes=[
                pltpu.VMEM((tm, 2 * tn), jnp.float32),  # fused accumulator
            ],
        ),
        compiler_params=pltpu.CompilerParams(
            dimension_semantics=("parallel", "parallel", "arbitrary"),
            vmem_limit_bytes=vmem_limit,
        ),
        cost_estimate=cost,
    )(xp, wc, bc)

    if (Mp, Np) != (M, out_dims):
        out = out[:M, :out_dims]
    return out.reshape(*orig_batch, out_dims)


def swiglu_ref(x, w1, b1, w2, b2):
    z1 = jnp.einsum("...k,nk->...n", x, w1) + b1
    z2 = jnp.einsum("...k,nk->...n", x, w2) + b2
    return z1 * (z2 * jax.nn.sigmoid(z2))


if __name__ == "__main__":
    # Shapes consistent with the module: batch=2, seq=8, in_dims=32, out_dims=32.
    B, S, IN, OUT = 2, 8, 32, 32

    key = jax.random.PRNGKey(0)
    kx, kw1, kb1, kw2, kb2 = jax.random.split(key, 5)
    x = jax.random.normal(kx, (B, S, IN), dtype=jnp.float32)
    # Mimic torch.nn.Linear init scale (uniform(-1/sqrt(in), 1/sqrt(in))).
    lim = 1.0 / math.sqrt(IN)
    w1 = jax.random.uniform(kw1, (OUT, IN), jnp.float32, -lim, lim)
    b1 = jax.random.uniform(kb1, (OUT,), jnp.float32, -lim, lim)
    w2 = jax.random.uniform(kw2, (OUT, IN), jnp.float32, -lim, lim)
    b2 = jax.random.uniform(kb2, (OUT,), jnp.float32, -lim, lim)

    out = jax.block_until_ready(swiglu(x, w1, b1, w2, b2))
    ref = swiglu_ref(x, w1, b1, w2, b2)
    assert out.shape == (B, S, OUT)
    assert jnp.allclose(out, ref, atol=1e-5, rtol=1e-5), "f32 mismatch vs reference"

    # Exercise the multi-tile grid, K-accumulation, and padding paths with
    # small explicit tiles (grid = (2, 2, 2), non-aligned out_dims).
    IN2, OUT2 = 256, 160
    x2 = jax.random.normal(kx, (3, 5, IN2), dtype=jnp.float32)
    lim2 = 1.0 / math.sqrt(IN2)
    w1b = jax.random.uniform(kw1, (OUT2, IN2), jnp.float32, -lim2, lim2)
    b1b = jax.random.uniform(kb1, (OUT2,), jnp.float32, -lim2, lim2)
    w2b = jax.random.uniform(kw2, (OUT2, IN2), jnp.float32, -lim2, lim2)
    b2b = jax.random.uniform(kb2, (OUT2,), jnp.float32, -lim2, lim2)

    out2 = jax.block_until_ready(
        swiglu(x2, w1b, b1b, w2b, b2b, tm=8, tk=128, tn=128))
    ref2 = swiglu_ref(x2, w1b, b1b, w2b, b2b)
    assert out2.shape == (3, 5, OUT2)
    assert jnp.allclose(out2, ref2, atol=1e-5, rtol=1e-5), "tiled f32 mismatch"

    # bf16 MXU operands with f32 accumulation (recommended fast path).
    out3 = jax.block_until_ready(
        swiglu(x2, w1b, b1b, w2b, b2b, compute_dtype=jnp.bfloat16))
    assert jnp.allclose(out3, ref2, atol=3e-2, rtol=3e-2), "bf16 path mismatch"

    print("KERNEL_OK")
</pallas_src>

<mosaic_0001>
module attributes {stable_mosaic.version = 11 : i64} {
  func.func @_swiglu_kernel(%arg0: i32, %arg1: i32, %arg2: i32, %arg3: memref<16x128xf32, #tpu.memory_space<vmem>>, %arg4: memref<128x256xf32, #tpu.memory_space<vmem>>, %arg5: memref<1x256xf32, #tpu.memory_space<vmem>>, %arg6: memref<16x128xf32, #tpu.memory_space<vmem>>, %arg7: memref<16x256xf32, #tpu.memory_space<vmem>>) attributes {dimension_semantics = [#tpu.dimension_semantics<parallel>, #tpu.dimension_semantics<parallel>, #tpu.dimension_semantics<arbitrary>], iteration_bounds = array<i64: 1, 1, 1>, scalar_prefetch = 0 : i64, scratch_operands = 1 : i64, tpu.core_type = #tpu.core_type<tc>, window_params = [{transform_indices = @transform_0, window_bounds = array<i64: 16, 128>}, {transform_indices = @transform_1, window_bounds = array<i64: 128, 256>}, {transform_indices = @transform_2, window_bounds = array<i64: 1, 256>}, {transform_indices = @transform_3, window_bounds = array<i64: 16, 128>}]} {
    %c0_i32 = arith.constant 0 : i32
    %0 = arith.cmpi eq, %arg2, %c0_i32 : i32
    %1 = arith.extui %0 : i1 to i32
    %c0_i32_0 = arith.constant 0 : i32
    %2 = arith.cmpi ne, %1, %c0_i32_0 : i32
    scf.if %2 {
      %c0_10 = arith.constant 0 : index
      %c0_11 = arith.constant 0 : index
      %12 = vector.load %arg5[%c0_10, %c0_11] : memref<1x256xf32, #tpu.memory_space<vmem>>, vector<1x256xf32>
      %13 = vector.shape_cast %12 : vector<1x256xf32> to vector<1x256xf32>
      %14 = vector.broadcast %13 : vector<1x256xf32> to vector<16x256xf32>
      %c0_12 = arith.constant 0 : index
      %c0_13 = arith.constant 0 : index
      %15 = vector.load %arg7[%c0_12, %c0_13] : memref<16x256xf32, #tpu.memory_space<vmem>>, vector<16x256xf32>
      tpu.vector_store %arg7[%c0_12, %c0_13], %14 {strides = array<i32>} : memref<16x256xf32, #tpu.memory_space<vmem>>, vector<16x256xf32>,
    } else {
    }
    %c0 = arith.constant 0 : index
    %c0_1 = arith.constant 0 : index
    %3 = vector.load %arg7[%c0, %c0_1] : memref<16x256xf32, #tpu.memory_space<vmem>>, vector<16x256xf32>
    %c0_2 = arith.constant 0 : index
    %c0_3 = arith.constant 0 : index
    %4 = vector.load %arg3[%c0_2, %c0_3] : memref<16x128xf32, #tpu.memory_space<vmem>>, vector<16x128xf32>
    %c0_4 = arith.constant 0 : index
    %c0_5 = arith.constant 0 : index
    %5 = vector.load %arg4[%c0_4, %c0_5] : memref<128x256xf32, #tpu.memory_space<vmem>>, vector<128x256xf32>
    %cst = arith.constant dense<0.000000e+00> : vector<16x256xf32>
    %6 = tpu.matmul %4, %5, %cst {dimension_numbers = #tpu.dot_dimension_numbers<[1], [0], [0], [1], [0, 0, 1, 1], [], []>} : vector<16x128xf32>, vector<128x256xf32>, vector<16x256xf32> -> vector<16x256xf32>
    %7 = arith.addf %3, %6 : vector<16x256xf32>
    %c0_6 = arith.constant 0 : index
    %c0_7 = arith.constant 0 : index
    %8 = vector.load %arg7[%c0_6, %c0_7] : memref<16x256xf32, #tpu.memory_space<vmem>>, vector<16x256xf32>
    tpu.vector_store %arg7[%c0_6, %c0_7], %7 {strides = array<i32>} : memref<16x256xf32, #tpu.memory_space<vmem>>, vector<16x256xf32>,
    %c0_i32_8 = arith.constant 0 : i32
    %9 = arith.cmpi eq, %arg2, %c0_i32_8 : i32
    %10 = arith.extui %9 : i1 to i32
    %c0_i32_9 = arith.constant 0 : i32
    %11 = arith.cmpi ne, %10, %c0_i32_9 : i32
    scf.if %11 {
      %c0_10 = arith.constant 0 : index
      %c0_11 = arith.constant 0 : index
      %12 = vector.load %arg7[%c0_10, %c0_11] : memref<16x256xf32, #tpu.memory_space<vmem>>, vector<16x128xf32>
      %c0_12 = arith.constant 0 : index
      %c128 = arith.constant 128 : index
      %13 = vector.load %arg7[%c0_12, %c128] : memref<16x256xf32, #tpu.memory_space<vmem>>, vector<16x128xf32>
      %14 = arith.negf %13 : vector<16x128xf32>
      %15 = math.exp %14 : vector<16x128xf32>
      %cst_13 = arith.constant 1.000000e+00 : f32
      %16 = vector.broadcast %cst_13 : f32 to vector<16x128xf32>
      %17 = arith.addf %16, %15 : vector<16x128xf32>
      %18 = arith.divf %16, %17 : vector<16x128xf32>
      %19 = arith.mulf %13, %18 : vector<16x128xf32>
      %20 = arith.mulf %12, %19 : vector<16x128xf32>
      %c0_14 = arith.constant 0 : index
      %c0_15 = arith.constant 0 : index
      %21 = vector.load %arg6[%c0_14, %c0_15] : memref<16x128xf32, #tpu.memory_space<vmem>>, vector<16x128xf32>
      tpu.vector_store %arg6[%c0_14, %c0_15], %20 {strides = array<i32>} : memref<16x128xf32, #tpu.memory_space<vmem>>, vector<16x128xf32>,
    } else {
    }
    return
  }
  func.func @transform_0(%arg0: i32, %arg1: i32, %arg2: i32) -> (i32, i32) {
    %c0_i32 = arith.constant 0 : i32
    return %arg0, %arg2 : i32, i32
  }
  func.func @transform_1(%arg0: i32, %arg1: i32, %arg2: i32) -> (i32, i32) {
    %c0_i32 = arith.constant 0 : i32
    return %arg2, %arg1 : i32, i32
  }
  func.func @transform_2(%arg0: i32, %arg1: i32, %arg2: i32) -> (i32, i32) {
    %c0_i32 = arith.constant 0 : i32
    %c0_i32_0 = arith.constant 0 : i32
    return %c0_i32, %arg1 : i32, i32
  }
  func.func @transform_3(%arg0: i32, %arg1: i32, %arg2: i32) -> (i32, i32) {
    %c0_i32 = arith.constant 0 : i32
    return %arg0, %arg1 : i32, i32
  }
}

</mosaic_0001>

<bundles_post_ra>
// kernel: tpu_custom_call.1
= control target key start
LH: loop header
LB: loop body
LE: loop exit
PB: predicated region body
PF: predicated region fallthrough
CT: control target
= control target key end

     0   :  { %8 = vsyncpa [#allocation4], 0  ;;  %s391_s0 = inlined_call_operand.hbm [shape: f32[16,128], index: 0, kind: input, shape index: {}]   ;;  %s392_s1 = inlined_call_operand.hbm [shape: f32[128,256], index: 1, kind: input, shape index: {}]   ;;  %s393_s2 = inlined_call_operand.vmem [shape: f32[1,256], index: 2, kind: input, shape index: {}]   ;;  %s394_s3 = inlined_call_operand.hbm [shape: f32[16,128], index: 3, kind: output, shape index: {}]  }
   0x1   :  { %9 = vsyncpa [#allocation7], 0 }
   0x2   :  { %10 = vsyncpa [#allocation5], 0  ;;  %s345_s12 = smov [#allocation3]  }
   0x3   :  { %s16_s13 = sshll.u32 %s345_s12, 4  ;;  %s17_s13 = int_to_ptr.vmem [resolvable:$true] %s16_s13 }
   0x4   :  { %s287_s14 = scalar_lea.vmem %s17_s13, 256  ;;  %p292_p1 = scmp.lt.s32.totalorder %s17_s13, %s17_s13 }
   0x5   :  { %p288_p0 = scmp.ne.s32.totalorder %s17_s13, %s287_s14  ;;  %p293_p2 = scmp.lt.s32.totalorder %s287_s14, %s287_s14 }
   0x7   :  { %p294_p3 = por %p293_p2, %p292_p1 }
   0x9   :  { %p295_p4 = pnand %p294_p3, %p288_p0 }
   0xb   :  { %298 = shalt.err (!%p295_p4)
}
   0xc   :  { %s346_s15 = smov 128   ;;  %s347_s16 = smov 8  }
   0xd   :  { %22 = dma.hbm_to_vmem [thread:$0]  %s391_s0, 256, %s17_s13, [#allocation4], %s346_s15, %s346_s15, %s347_s16  }
   0xe   :  { %s348_s19 = smov [#allocation6]  }
   0xf   :  { %s28_s20 = sshll.u32 %s348_s19, 4  ;;  %s29_s20 = int_to_ptr.vmem [resolvable:$true] %s28_s20 }
  0x10   :  { %s307_s21 = scalar_lea.vmem %s29_s20, 4096  ;;  %p312_p6 = scmp.lt.s32.totalorder %s29_s20, %s29_s20 }
  0x11   :  { %p308_p5 = scmp.ne.s32.totalorder %s29_s20, %s307_s21  ;;  %p313_p7 = scmp.lt.s32.totalorder %s307_s21, %s307_s21 }
  0x13   :  { %p314_p8 = por %p313_p7, %p312_p6 }
  0x15   :  { %p315_p9 = pnand %p314_p8, %p308_p5 }
  0x17   :  { %318 = shalt.err (!%p315_p9)
}
  0x18   :  { %s349_s22 = smov 256   ;;  %s350_s23 = smov 16  }
  0x19   :  { %34 = dma.hbm_to_vmem [thread:$0]  %s392_s1, 4096, %s29_s20, [#allocation7], %s349_s22, %s349_s22, %s350_s23  }
  0x1a   :  { %339 = dma.done.wait [#allocation4], 256  }
  0x1b   :  { %340 = vsyncadd [#allocation4], 4294967040 }
  0x1c   :  { %341 = dma.done.wait [#allocation7], 4096  }
  0x1d   :  { %342 = vsyncadd [#allocation7], 4294963200  ;;  %v351_v0 = vmov 0.0   ;;  %v100_v1 = vld [vmem:[#allocation6 + $0xf8] sm:$0xff]  ;;  %v99_v2 = vld [vmem:[#allocation6 + $0xf0] sm:$0xff]  ;;  %v49_v35 = vlaneseq }
  0x1e   :  { %165 = vmatprep.mubr.f32.mxu0 %v351_v0  ;;  %171 = vmatprep.mubr.f32.mxu1 %v351_v0  ;;  %v98_v3 = vld [vmem:[#allocation6 + $0xe8] sm:$0xff]  ;;  %v97_v4 = vld [vmem:[#allocation6 + $0xe0] sm:$0xff]  ;;  %v96_v5 = vld [vmem:[#allocation6 + $0xd8] sm:$0xff] }
  0x1f   :  { %101 = vmatprep.subr.mxu0 %v100_v1  ;;  %231 = vmatprep.subr.mxu1 %v100_v1  ;;  %v95_v6 = vld [vmem:[#allocation6 + $0xd0] sm:$0xff]  ;;  %v94_v7 = vld [vmem:[#allocation6 + $0xc8] sm:$0xff]  ;;  %v93_v8 = vld [vmem:[#allocation6 + $0xc0] sm:$0xff]  ;;  %v50_v36 = vshrl.u32 %v49_v35, 7 }
  0x20   :  { %102 = vmatpush1.msra.mxu0 %v99_v2  ;;  %247 = vmatpush1.msra.mxu1 %v99_v2  ;;  %v92_v9 = vld [vmem:[#allocation6 + $0xb8] sm:$0xff]  ;;  %v91_v10 = vld [vmem:[#allocation6 + $0xb0] sm:$0xff]  ;;  %v90_v11 = vld [vmem:[#allocation6 + $0xa8] sm:$0xff] }
  0x21   :  { %103 = vmatprep.subr.mxu0 %v98_v3  ;;  %232 = vmatprep.subr.mxu1 %v98_v3  ;;  %v89_v12 = vld [vmem:[#allocation6 + $0xa0] sm:$0xff]  ;;  %v88_v13 = vld [vmem:[#allocation6 + $0x98] sm:$0xff]  ;;  %v87_v14 = vld [vmem:[#allocation6 + $0x90] sm:$0xff]  ;;  %v55_v37 = vsub.s32 1, %v50_v36  ;;  %v51_v52 = vsub.s32 0, %v50_v36 }
  0x22   :  { %104 = vmatpush1.msra.mxu0 %v97_v4  ;;  %248 = vmatpush1.msra.mxu1 %v97_v4  ;;  %v86_v15 = vld [vmem:[#allocation6 + $0x88] sm:$0xff]  ;;  %v85_v16 = vld [vmem:[#allocation6 + $0x80] sm:$0xff]  ;;  %v84_v17 = vld [vmem:[#allocation6 + $0x78] sm:$0xff] }
  0x23   :  { %105 = vmatprep.subr.mxu0 %v96_v5  ;;  %233 = vmatprep.subr.mxu1 %v96_v5  ;;  %v83_v18 = vld [vmem:[#allocation6 + $0x70] sm:$0xff]  ;;  %v82_v19 = vld [vmem:[#allocation6 + $0x68] sm:$0xff]  ;;  %v81_v20 = vld [vmem:[#allocation6 + $0x60] sm:$0xff] }
  0x24   :  { %106 = vmatpush1.msra.mxu0 %v95_v6  ;;  %249 = vmatpush1.msra.mxu1 %v95_v6  ;;  %v80_v21 = vld [vmem:[#allocation6 + $0x58] sm:$0xff]  ;;  %v79_v22 = vld [vmem:[#allocation6 + $0x50] sm:$0xff]  ;;  %v78_v23 = vld [vmem:[#allocation6 + $0x48] sm:$0xff] }
  0x25   :  { %107 = vmatprep.subr.mxu0 %v94_v7  ;;  %234 = vmatprep.subr.mxu1 %v94_v7  ;;  %v77_v24 = vld [vmem:[#allocation6 + $0x40] sm:$0xff]  ;;  %v76_v25 = vld [vmem:[#allocation6 + $0x38] sm:$0xff]  ;;  %v75_v26 = vld [vmem:[#allocation6 + $0x30] sm:$0xff] }
  0x26   :  { %108 = vmatpush1.msra.mxu0 %v93_v8  ;;  %250 = vmatpush1.msra.mxu1 %v93_v8  ;;  %v74_v27 = vld [vmem:[#allocation6 + $0x28] sm:$0xff]  ;;  %v73_v28 = vld [vmem:[#allocation6 + $0x20] sm:$0xff]  ;;  %v72_v29 = vld [vmem:[#allocation6 + $0x18] sm:$0xff] }
  0x27   :  { %109 = vmatprep.subr.mxu0 %v92_v9  ;;  %235 = vmatprep.subr.mxu1 %v92_v9  ;;  %v71_v30 = vld [vmem:[#allocation6 + $0x10] sm:$0xff]  ;;  %v70_v31 = vld [vmem:[#allocation6 + $0x8] sm:$0xff]  ;;  %v69_v32 = vld [vmem:[#allocation6] sm:$0xff] }
  0x28   :  { %110 = vmatpush1.msra.mxu0 %v91_v10  ;;  %251 = vmatpush1.msra.mxu1 %v91_v10  ;;  %v67_v33 = vld [vmem:[#allocation3] sm:$0xff]  ;;  %v68_v34 = vld [vmem:[#allocation3 + $0x8] sm:$0xff] }
  0x29   :  { %111 = vmatprep.subr.mxu0 %v90_v11  ;;  %236 = vmatprep.subr.mxu1 %v90_v11  ;;  %v47_v38 = vld [vmem:[%s393_s2] sm:$0x3]  ;;  %s352_s2 = smov [#allocation8]  }
  0x2a   :  { %112 = vmatpush1.msra.mxu0 %v89_v12  ;;  %252 = vmatpush1.msra.mxu1 %v89_v12  ;;  %v56_v39 = vrot.slane %v47_v38, %v55_v37  ;;  %v52_v53 = vrot.slane %v47_v38, %v51_v52  ;;  %s216_s26 = sshll.u32 %s352_s2, 4  ;;  %s217_s26 = int_to_ptr.vmem [resolvable:$true] %s216_s26 }
  0x2b   :  { %113 = vmatprep.subr.mxu0 %v88_v13  ;;  %237 = vmatprep.subr.mxu1 %v88_v13  ;;  %s319_s27 = scalar_lea.vmem %s217_s26, 256  ;;  %p324_p11 = scmp.lt.s32.totalorder %s217_s26, %s217_s26 }
  0x2c   :  { %114 = vmatpush1.msra.mxu0 %v87_v14  ;;  %253 = vmatpush1.msra.mxu1 %v87_v14  ;;  %p320_p10 = scmp.ne.s32.totalorder %s217_s26, %s319_s27  ;;  %p325_p12 = scmp.lt.s32.totalorder %s319_s27, %s319_s27 }
  0x2d   :  { %115 = vmatprep.subr.mxu0 %v86_v15  ;;  %238 = vmatprep.subr.mxu1 %v86_v15 }
  0x2e   :  { %116 = vmatpush1.msra.mxu0 %v85_v16  ;;  %254 = vmatpush1.msra.mxu1 %v85_v16  ;;  %p326_p13 = por %p325_p12, %p324_p11 }
  0x2f   :  { %117 = vmatprep.subr.mxu0 %v84_v17  ;;  %239 = vmatprep.subr.mxu1 %v84_v17 }
  0x30   :  { %118 = vmatpush1.msra.mxu0 %v83_v18  ;;  %255 = vmatpush1.msra.mxu1 %v83_v18  ;;  %p327_p0 = pnand %p326_p13, %p320_p10 }
  0x31   :  { %119 = vmatprep.subr.mxu0 %v82_v19  ;;  %240 = vmatprep.subr.mxu1 %v82_v19 }
  0x32   :  { %120 = vmatpush1.msra.mxu0 %v81_v20  ;;  %256 = vmatpush1.msra.mxu1 %v81_v20 }
  0x33   :  { %121 = vmatprep.subr.mxu0 %v80_v21  ;;  %241 = vmatprep.subr.mxu1 %v80_v21 }
  0x34   :  { %122 = vmatpush1.msra.mxu0 %v79_v22  ;;  %257 = vmatpush1.msra.mxu1 %v79_v22 }
  0x35   :  { %123 = vmatprep.subr.mxu0 %v78_v23  ;;  %242 = vmatprep.subr.mxu1 %v78_v23 }
  0x36   :  { %124 = vmatpush1.msra.mxu0 %v77_v24  ;;  %258 = vmatpush1.msra.mxu1 %v77_v24 }
  0x37   :  { %125 = vmatprep.subr.mxu0 %v76_v25  ;;  %243 = vmatprep.subr.mxu1 %v76_v25 }
  0x38   :  { %126 = vmatpush1.msra.mxu0 %v75_v26  ;;  %259 = vmatpush1.msra.mxu1 %v75_v26 }
  0x39   :  { %127 = vmatprep.subr.mxu0 %v74_v27  ;;  %244 = vmatprep.subr.mxu1 %v74_v27 }
  0x3a   :  { %128 = vmatpush1.msra.mxu0 %v73_v28  ;;  %260 = vmatpush1.msra.mxu1 %v73_v28 }
  0x3b   :  { %129 = vmatprep.subr.mxu0 %v72_v29  ;;  %245 = vmatprep.subr.mxu1 %v72_v29 }
  0x3c   :  { %130 = vmatpush1.msra.mxu0 %v71_v30  ;;  %261 = vmatpush1.msra.mxu1 %v71_v30 }
  0x3d   :  { %131 = vmatprep.subr.mxu0 %v70_v31  ;;  %246 = vmatprep.subr.mxu1 %v70_v31 }
  0x3e   :  { %132 = vmatpush1.msra.mxu0 %v69_v32  ;;  %262 = vmatpush1.msra.mxu1 %v69_v32 }
  0x3f   :  { %166 = vmatmul.mubr.f32.vlgmr.msra.gmra.mxu0 %v67_v33  ;;  %172 = vmatmul.mubr.f32.vlgmr.msra.gmra.mxu1 %v68_v34 }
  0xff   :  { %v167_v40 = vpop.f32.mrf.mxu0  ;;  %v173_v41 = vpop.f32.mrf.mxu1 }
 0x100   :  { %v178_v56 = vadd.f32 %v167_v40, %v52_v53  ;;  %v180_v58 = vadd.f32 %v173_v41, %v52_v53 }
 0x101   :  { %v169_v42 = vpop.f32.mrf.mxu0  ;;  %v175_v43 = vpop.f32.mrf.mxu1 }
 0x102   :  { %v179_v44 = vadd.f32 %v169_v42, %v56_v39  ;;  %v181_v45 = vadd.f32 %v175_v43, %v56_v39 }
 0x104   :  { %v229_v46 = vmul.f32 -1.442695, %v179_v44  ;;  %v230_v47 = vmul.f32 -1.442695, %v181_v45 }
 0x106   :  { %271 = vpow2.f32 %v229_v46 }
 0x107   :  { %273 = vpow2.f32 %v230_v47 }
 0x113   :  { %v272_v48 = vpop.eup %271 }
 0x114   :  { %v274_v49 = vpop.eup %273  ;;  %v199_v50 = vadd.f32 1.0, %v272_v48 }
 0x115   :  { %v200_v51 = vadd.f32 1.0, %v274_v49 }
 0x116   :  { %275 = vrcp.f32 %v199_v50 }
 0x117   :  { %277 = vrcp.f32 %v200_v51 }
 0x123   :  { %v276_v54 = vpop.eup %275 }
 0x124   :  { %v278_v55 = vpop.eup %277  ;;  %v205_v57 = vmul.f32 %v276_v54, %v179_v44 }
 0x125   :  { %v206_v59 = vmul.f32 %v278_v55, %v181_v45 }
 0x126   :  { %v207_v60 = vmul.f32 %v205_v57, %v178_v56 }
 0x127   :  { %v208_v61 = vmul.f32 %v206_v59, %v180_v58 }
 0x128   :  { %209 = vst [vmem:[#allocation8] sm:$0xff] %v207_v60 }
 0x129   :  { %210 = vst [vmem:[#allocation8 + $0x8] sm:$0xff] %v208_v61 }
 0x12a   :  { %330 = shalt.err (!%p327_p0)
}
 0x12b   :  { %222 = dma.vmem_to_hbm [thread:$0]  %s217_s26, 256, %s394_s3, [#allocation5], %s346_s15, %s346_s15, %s347_s16  }
 0x12c   :  { %343 = dma.done.wait [#allocation5], 256  }
 0x12d   :  { %344 = vsyncadd [#allocation5], 4294967040 }
 0x12e   :  { %226 = vsyncpa [#allocation4], 1 }
 0x12f   :  { %227 = vsyncpa [#allocation7], 1 }
 0x130   :  { %228 = vsyncpa [#allocation5], 1 }

</bundles_post_ra>
